<compile_context>
chip_gen: v7x
topology: tpu7x:2x2x1
jax: 0.10.0
libtpu: 0.0.40
codegen_flags: <defaults>
</compile_context>

<pallas_src>
import functools

import jax
import jax.numpy as jnp
from jax.experimental import pallas as pl
from jax.experimental.pallas import tpu as pltpu


# ----------------------------------------------------------------------------
# Fused Pallas kernel:
#   one-hot embed -> conv bank (shifted matmuls) -> ReLU -> masked max-pool
#   -> linear1 -> ReLU -> linear2 -> sigmoid
# ----------------------------------------------------------------------------
def cnn_fused_kernel(tok_ref, emb_ref, wconv_ref, bconv_ref, mask_ref,
                     w1_ref, b1_ref, w2_ref, b2_ref, o_ref):
    """
    tok_ref  : (B_blk*L_tok, 1) i32   padded token ids (L_tok = L + k_max - 1)
    emb_ref  : (V_pad, D)       bf16  embedding table (rows >= V are zero)
    wconv_ref: (k_max, D, 128)  bf16  packed conv filter banks (taps >= k zero)
    bconv_ref: (1, 128)         f32   packed conv biases
    mask_ref : (1, L, 128)      f32   0/1 validity mask (t < L-k+1 per lane)
    w1_ref   : (128, 128)       bf16  linear1 weight (zero-padded)
    b1_ref   : (1, 128)         f32
    w2_ref   : (128, 128)       bf16  linear2 weight (zero-padded)
    b2_ref   : (1, 128)         f32
    o_ref    : (B_blk, 128)     f32   sigmoid outputs in lanes 0..C-1
    """
    B_blk, n_pad = o_ref.shape
    R_tok = tok_ref.shape[0]
    L_tok = R_tok // B_blk
    L = mask_ref.shape[1]
    k_max, D, _ = wconv_ref.shape
    V_pad = emb_ref.shape[0]

    # 1) Embedding lookup fused in-kernel: tiny-vocab one-hot MXU matmul.
    tok = tok_ref[...]                                               # (R_tok, 1)
    vid = jax.lax.broadcasted_iota(jnp.int32, (R_tok, V_pad), 1)
    onehot = (vid == tok).astype(jnp.bfloat16)                       # (R_tok, V_pad)
    emb2 = jnp.dot(onehot, emb_ref[...],
                   preferred_element_type=jnp.float32)               # (R_tok, D)
    emb3 = emb2.astype(jnp.bfloat16).reshape(B_blk, L_tok, D)

    # 2) Conv bank: k_max accumulating shifted matmuls (no im2col duplication).
    acc = jnp.zeros((B_blk * L, n_pad), jnp.float32)
    for j in range(k_max):                                           # static unroll
        x_j = emb3[:, j:j + L, :].reshape(B_blk * L, D)
        acc = acc + jnp.dot(x_j, wconv_ref[j],
                            preferred_element_type=jnp.float32)
    conv = jnp.maximum(acc + bconv_ref[...], 0.0)                    # bias + ReLU

    # 3) Mask invalid time positions (precomputed 0/1 mask), max-pool over time.
    #    Valid because conv is post-ReLU (>= 0).
    conv3 = conv.reshape(B_blk, L, n_pad)
    pooled = jnp.max(conv3 * mask_ref[...], axis=1)                  # (B_blk, 128)

    # 4) MLP: linear1 -> ReLU -> linear2 -> sigmoid (exp + reciprocal on EUP).
    h = jnp.dot(pooled.astype(jnp.bfloat16), w1_ref[...],
                preferred_element_type=jnp.float32) + b1_ref[...]
    h = jnp.maximum(h, 0.0)
    logits = jnp.dot(h.astype(jnp.bfloat16), w2_ref[...],
                     preferred_element_type=jnp.float32) + b2_ref[...]
    o_ref[...] = pl.reciprocal(1.0 + jnp.exp(-logits), approx=True)


# ----------------------------------------------------------------------------
# Parameter init (mirrors the PyTorch module's shapes) and packing
# ----------------------------------------------------------------------------
def init_cnn_params(key, vocab_size, emb_dim, Co, Hu, C, Ks):
    ks = jax.random.split(key, 2 * len(Ks) + 5)
    params = {}
    emb = jax.random.normal(ks[0], (vocab_size, emb_dim), jnp.float32) * 0.1
    emb = emb.at[0].set(0.0)  # padding index 0
    params["embeddings"] = emb
    params["conv_w"] = []
    params["conv_b"] = []
    for i, k in enumerate(Ks):
        w = jax.random.normal(ks[1 + 2 * i], (k, emb_dim, Co), jnp.float32) * 0.1
        b = jax.random.normal(ks[2 + 2 * i], (1, Co), jnp.float32) * 0.01
        params["conv_w"].append(w)
        params["conv_b"].append(b)
    F_in = Co * len(Ks)
    params["w1"] = jax.random.normal(ks[-4], (F_in, Hu[0]), jnp.float32) * 0.1
    params["b1"] = jax.random.normal(ks[-3], (1, Hu[0]), jnp.float32) * 0.01
    params["w2"] = jax.random.normal(ks[-2], (Hu[-1], C), jnp.float32) * 0.1
    params["b2"] = jax.random.normal(ks[-1], (1, C), jnp.float32) * 0.01
    return params


def pack_cnn_params(params, Ks, L, n_pad=128, h_pad=128):
    """One-time packing of weights into lane-dense, zero-padded kernel operands."""
    V, D = params["embeddings"].shape
    Co = params["conv_w"][0].shape[2]
    k_max = max(Ks)
    Hu = params["w1"].shape[1]
    C = params["w2"].shape[1]
    F_real = Co * len(Ks)
    assert F_real <= n_pad and Hu <= h_pad and C <= n_pad
    V_pad = max(128, pl.cdiv(V, 128) * 128)

    wbank = jnp.zeros((k_max, D, n_pad), jnp.float32)
    bbank = jnp.zeros((1, n_pad), jnp.float32)
    mask = jnp.zeros((1, L, n_pad), jnp.float32)
    for i, k in enumerate(Ks):
        sl = slice(i * Co, (i + 1) * Co)
        wbank = wbank.at[:k, :, sl].set(params["conv_w"][i])   # taps >= k stay 0
        bbank = bbank.at[:, sl].set(params["conv_b"][i])
        mask = mask.at[:, :L - k + 1, sl].set(1.0)             # valid positions

    emb_pad = jnp.zeros((V_pad, D), jnp.float32).at[:V].set(params["embeddings"])

    packed = {
        # bf16 at the matmul boundary; f32 accumulation inside the kernel.
        "emb": emb_pad.astype(jnp.bfloat16),
        "wconv": wbank.astype(jnp.bfloat16),
        "bconv": bbank,
        "mask": mask,
        "w1": jnp.zeros((n_pad, h_pad), jnp.float32)
              .at[:F_real, :Hu].set(params["w1"]).astype(jnp.bfloat16),
        "b1": jnp.zeros((1, h_pad), jnp.float32).at[:, :Hu].set(params["b1"]),
        "w2": jnp.zeros((h_pad, n_pad), jnp.float32)
              .at[:Hu, :C].set(params["w2"]).astype(jnp.bfloat16),
        "b2": jnp.zeros((1, n_pad), jnp.float32).at[:, :C].set(params["b2"]),
    }
    return packed


# ----------------------------------------------------------------------------
# Forward pass
# ----------------------------------------------------------------------------
def _pick_batch_block(B, cap=64):
    """Whole-sequence batch blocks; multiples of 8 once B > 8 (sublane rule)."""
    if B <= 8:
        return B
    for cand in range(min(B, cap), 7, -1):
        if B % cand == 0 and cand % 8 == 0:
            return cand
    return B


@functools.partial(jax.jit, static_argnames=("num_classes",))
def cnn_forward(packed, tokens, *, num_classes):
    """tokens: (B, L) int32 token ids  ->  (B, C) f32 sigmoid outputs."""
    B, L = tokens.shape
    k_max, D, n_pad = packed["wconv"].shape
    V_pad = packed["emb"].shape[0]
    h_pad = packed["w1"].shape[1]
    L_tok = L + k_max - 1
    B_blk = _pick_batch_block(B)
    grid = (B // B_blk,)

    # Only id-level prep in the wrapper: pad each sequence with k_max-1 trailing
    # pad tokens (id 0) and flatten to rows.  No embedding gather, no im2col.
    tok_pad = jnp.pad(tokens.astype(jnp.int32), ((0, 0), (0, k_max - 1)))
    tok_rows = tok_pad.reshape(B * L_tok, 1)

    out_pad = pl.pallas_call(
        cnn_fused_kernel,
        out_shape=jax.ShapeDtypeStruct((B, n_pad), jnp.float32),
        grid=grid,
        in_specs=[
            pl.BlockSpec((B_blk * L_tok, 1), lambda b: (b, 0)),       # token ids
            pl.BlockSpec((V_pad, D), lambda b: (0, 0)),               # emb table
            pl.BlockSpec((k_max, D, n_pad), lambda b: (0, 0, 0)),     # conv W
            pl.BlockSpec((1, n_pad), lambda b: (0, 0)),               # conv b
            pl.BlockSpec((1, L, n_pad), lambda b: (0, 0, 0)),         # time mask
            pl.BlockSpec((n_pad, h_pad), lambda b: (0, 0)),           # w1
            pl.BlockSpec((1, h_pad), lambda b: (0, 0)),               # b1
            pl.BlockSpec((h_pad, n_pad), lambda b: (0, 0)),           # w2
            pl.BlockSpec((1, n_pad), lambda b: (0, 0)),               # b2
        ],
        out_specs=pl.BlockSpec((B_blk, n_pad), lambda b: (b, 0)),
        compiler_params=pltpu.CompilerParams(
            dimension_semantics=("parallel",)),
    )(tok_rows, packed["emb"], packed["wconv"], packed["bconv"], packed["mask"],
      packed["w1"], packed["b1"], packed["w2"], packed["b2"])

    return out_pad[:, :num_classes]


# ----------------------------------------------------------------------------
# Pure-JAX reference (f32) for correctness checking
# ----------------------------------------------------------------------------
def cnn_reference(params, tokens, Ks):
    emb = jnp.take(params["embeddings"], tokens, axis=0)       # (B, L, D) f32
    B, L, D = emb.shape
    feats = []
    for i, k in enumerate(Ks):
        w = params["conv_w"][i]                                # (k, D, Co)
        b = params["conv_b"][i]                                # (1, Co)
        L_out = L - k + 1
        conv = jnp.stack(
            [jnp.einsum("bkd,kdc->bc", emb[:, t:t + k, :], w) for t in range(L_out)],
            axis=1,
        ) + b                                                  # (B, L_out, Co)
        feats.append(jnp.max(jnp.maximum(conv, 0.0), axis=1))  # ReLU + max-pool
    f = jnp.concatenate(feats, axis=1)
    h = jnp.maximum(f @ params["w1"] + params["b1"], 0.0)
    return jax.nn.sigmoid(h @ params["w2"] + params["b2"])


# ----------------------------------------------------------------------------
# Main
# ----------------------------------------------------------------------------
if __name__ == "__main__":
    # Small shapes consistent with the module's forward pass.
    vocab_size = 50
    emb_dim = 32
    Co = 8            # filters per kernel size
    Hu = [32]         # hidden units
    C = 4             # output classes
    Ks = [3, 4, 5]    # kernel sizes
    B, L = 2, 16      # batch, sequence length

    key = jax.random.PRNGKey(0)
    k_params, k_tokens = jax.random.split(key)

    params = init_cnn_params(k_params, vocab_size, emb_dim, Co, Hu, C, Ks)
    packed = pack_cnn_params(params, Ks, L)
    tokens = jax.random.randint(k_tokens, (B, L), 0, vocab_size, dtype=jnp.int32)

    out = cnn_forward(packed, tokens, num_classes=C)
    out = jax.block_until_ready(out)

    ref = cnn_reference(params, tokens, Ks)

    assert out.shape == (B, C)
    assert bool(jnp.all((out >= 0.0) & (out <= 1.0)))
    assert bool(jnp.max(jnp.abs(out - ref)) < 5e-2), "mismatch vs pure-JAX reference"
    print("KERNEL_OK")
</pallas_src>

<mosaic_0001>
module attributes {stable_mosaic.version = 11 : i64} {
  func.func @cnn_fused_kernel(%arg0: i32, %arg1: memref<40x1xi32, #tpu.memory_space<vmem>>, %arg2: memref<128x32xbf16, #tpu.memory_space<vmem>>, %arg3: memref<5x32x128xbf16, #tpu.memory_space<vmem>>, %arg4: memref<1x128xf32, #tpu.memory_space<vmem>>, %arg5: memref<1x16x128xf32, #tpu.memory_space<vmem>>, %arg6: memref<128x128xbf16, #tpu.memory_space<vmem>>, %arg7: memref<1x128xf32, #tpu.memory_space<vmem>>, %arg8: memref<128x128xbf16, #tpu.memory_space<vmem>>, %arg9: memref<1x128xf32, #tpu.memory_space<vmem>>, %arg10: memref<2x128xf32, #tpu.memory_space<vmem>>) attributes {dimension_semantics = [#tpu.dimension_semantics<parallel>], iteration_bounds = array<i64: 1>, scalar_prefetch = 0 : i64, scratch_operands = 0 : i64, tpu.core_type = #tpu.core_type<tc>, window_params = [{transform_indices = @transform_0, window_bounds = array<i64: 40, 1>}, {pipeline_mode = #tpu.pipeline_mode<synchronous>, transform_indices = @transform_1, window_bounds = array<i64: 128, 32>}, {pipeline_mode = #tpu.pipeline_mode<synchronous>, transform_indices = @transform_2, window_bounds = array<i64: 5, 32, 128>}, {pipeline_mode = #tpu.pipeline_mode<synchronous>, transform_indices = @transform_3, window_bounds = array<i64: 1, 128>}, {pipeline_mode = #tpu.pipeline_mode<synchronous>, transform_indices = @transform_4, window_bounds = array<i64: 1, 16, 128>}, {pipeline_mode = #tpu.pipeline_mode<synchronous>, transform_indices = @transform_5, window_bounds = array<i64: 128, 128>}, {pipeline_mode = #tpu.pipeline_mode<synchronous>, transform_indices = @transform_6, window_bounds = array<i64: 1, 128>}, {pipeline_mode = #tpu.pipeline_mode<synchronous>, transform_indices = @transform_7, window_bounds = array<i64: 128, 128>}, {pipeline_mode = #tpu.pipeline_mode<synchronous>, transform_indices = @transform_8, window_bounds = array<i64: 1, 128>}, {transform_indices = @transform_9, window_bounds = array<i64: 2, 128>}]} {
    %c0 = arith.constant 0 : index
    %c0_0 = arith.constant 0 : index
    %0 = vector.load %arg1[%c0, %c0_0] : memref<40x1xi32, #tpu.memory_space<vmem>>, vector<40x1xi32>
    %1 = tpu.iota {dimensions = array<i32: 1>} : vector<40x128xi32>
    %2 = vector.broadcast %0 : vector<40x1xi32> to vector<40x128xi32>
    %3 = arith.cmpi eq, %1, %2 : vector<40x128xi32>
    %4 = arith.extui %3 : vector<40x128xi1> to vector<40x128xi32>
    %5 = arith.sitofp %4 : vector<40x128xi32> to vector<40x128xf32>
    %6 = arith.truncf %5 : vector<40x128xf32> to vector<40x128xbf16>
    %c0_1 = arith.constant 0 : index
    %c0_2 = arith.constant 0 : index
    %7 = vector.load %arg2[%c0_1, %c0_2] : memref<128x32xbf16, #tpu.memory_space<vmem>>, vector<128x32xbf16>
    %cst = arith.constant dense<0.000000e+00> : vector<40x32xf32>
    %8 = tpu.matmul %6, %7, %cst {dimension_numbers = #tpu.dot_dimension_numbers<[1], [0], [0], [1], [0, 0, 1, 1], [], []>} : vector<40x128xbf16>, vector<128x32xbf16>, vector<40x32xf32> -> vector<40x32xf32>
    %9 = arith.truncf %8 : vector<40x32xf32> to vector<40x32xbf16>
    %10 = vector.shape_cast %9 : vector<40x32xbf16> to vector<2x20x32xbf16>
    %cst_3 = arith.constant 0.000000e+00 : f32
    %11 = vector.broadcast %cst_3 : f32 to vector<32x128xf32>
    %12 = vector.extract_strided_slice %10 {offsets = [0, 0, 0], sizes = [2, 16, 32], strides = [1, 1, 1]} : vector<2x20x32xbf16> to vector<2x16x32xbf16>
    %13 = vector.shape_cast %12 : vector<2x16x32xbf16> to vector<32x32xbf16>
    %c0_4 = arith.constant 0 : index
    %c0_5 = arith.constant 0 : index
    %c0_6 = arith.constant 0 : index
    %14 = vector.load %arg3[%c0_4, %c0_5, %c0_6] : memref<5x32x128xbf16, #tpu.memory_space<vmem>>, vector<1x32x128xbf16>
    %15 = vector.shape_cast %14 : vector<1x32x128xbf16> to vector<32x128xbf16>
    %cst_7 = arith.constant dense<0.000000e+00> : vector<32x128xf32>
    %16 = tpu.matmul %13, %15, %cst_7 {dimension_numbers = #tpu.dot_dimension_numbers<[1], [0], [0], [1], [0, 0, 1, 1], [], []>} : vector<32x32xbf16>, vector<32x128xbf16>, vector<32x128xf32> -> vector<32x128xf32>
    %17 = arith.addf %11, %16 : vector<32x128xf32>
    %18 = vector.extract_strided_slice %10 {offsets = [0, 1, 0], sizes = [2, 16, 32], strides = [1, 1, 1]} : vector<2x20x32xbf16> to vector<2x16x32xbf16>
    %19 = vector.shape_cast %18 : vector<2x16x32xbf16> to vector<32x32xbf16>
    %c1 = arith.constant 1 : index
    %c0_8 = arith.constant 0 : index
    %c0_9 = arith.constant 0 : index
    %20 = vector.load %arg3[%c1, %c0_8, %c0_9] : memref<5x32x128xbf16, #tpu.memory_space<vmem>>, vector<1x32x128xbf16>
    %21 = vector.shape_cast %20 : vector<1x32x128xbf16> to vector<32x128xbf16>
    %cst_10 = arith.constant dense<0.000000e+00> : vector<32x128xf32>
    %22 = tpu.matmul %19, %21, %cst_10 {dimension_numbers = #tpu.dot_dimension_numbers<[1], [0], [0], [1], [0, 0, 1, 1], [], []>} : vector<32x32xbf16>, vector<32x128xbf16>, vector<32x128xf32> -> vector<32x128xf32>
    %23 = arith.addf %17, %22 : vector<32x128xf32>
    %24 = vector.extract_strided_slice %10 {offsets = [0, 2, 0], sizes = [2, 16, 32], strides = [1, 1, 1]} : vector<2x20x32xbf16> to vector<2x16x32xbf16>
    %25 = vector.shape_cast %24 : vector<2x16x32xbf16> to vector<32x32xbf16>
    %c2 = arith.constant 2 : index
    %c0_11 = arith.constant 0 : index
    %c0_12 = arith.constant 0 : index
    %26 = vector.load %arg3[%c2, %c0_11, %c0_12] : memref<5x32x128xbf16, #tpu.memory_space<vmem>>, vector<1x32x128xbf16>
    %27 = vector.shape_cast %26 : vector<1x32x128xbf16> to vector<32x128xbf16>
    %cst_13 = arith.constant dense<0.000000e+00> : vector<32x128xf32>
    %28 = tpu.matmul %25, %27, %cst_13 {dimension_numbers = #tpu.dot_dimension_numbers<[1], [0], [0], [1], [0, 0, 1, 1], [], []>} : vector<32x32xbf16>, vector<32x128xbf16>, vector<32x128xf32> -> vector<32x128xf32>
    %29 = arith.addf %23, %28 : vector<32x128xf32>
    %30 = vector.extract_strided_slice %10 {offsets = [0, 3, 0], sizes = [2, 16, 32], strides = [1, 1, 1]} : vector<2x20x32xbf16> to vector<2x16x32xbf16>
    %31 = vector.shape_cast %30 : vector<2x16x32xbf16> to vector<32x32xbf16>
    %c3 = arith.constant 3 : index
    %c0_14 = arith.constant 0 : index
    %c0_15 = arith.constant 0 : index
    %32 = vector.load %arg3[%c3, %c0_14, %c0_15] : memref<5x32x128xbf16, #tpu.memory_space<vmem>>, vector<1x32x128xbf16>
    %33 = vector.shape_cast %32 : vector<1x32x128xbf16> to vector<32x128xbf16>
    %cst_16 = arith.constant dense<0.000000e+00> : vector<32x128xf32>
    %34 = tpu.matmul %31, %33, %cst_16 {dimension_numbers = #tpu.dot_dimension_numbers<[1], [0], [0], [1], [0, 0, 1, 1], [], []>} : vector<32x32xbf16>, vector<32x128xbf16>, vector<32x128xf32> -> vector<32x128xf32>
    %35 = arith.addf %29, %34 : vector<32x128xf32>
    %36 = vector.extract_strided_slice %10 {offsets = [0, 4, 0], sizes = [2, 16, 32], strides = [1, 1, 1]} : vector<2x20x32xbf16> to vector<2x16x32xbf16>
    %37 = vector.shape_cast %36 : vector<2x16x32xbf16> to vector<32x32xbf16>
    %c4 = arith.constant 4 : index
    %c0_17 = arith.constant 0 : index
    %c0_18 = arith.constant 0 : index
    %38 = vector.load %arg3[%c4, %c0_17, %c0_18] : memref<5x32x128xbf16, #tpu.memory_space<vmem>>, vector<1x32x128xbf16>
    %39 = vector.shape_cast %38 : vector<1x32x128xbf16> to vector<32x128xbf16>
    %cst_19 = arith.constant dense<0.000000e+00> : vector<32x128xf32>
    %40 = tpu.matmul %37, %39, %cst_19 {dimension_numbers = #tpu.dot_dimension_numbers<[1], [0], [0], [1], [0, 0, 1, 1], [], []>} : vector<32x32xbf16>, vector<32x128xbf16>, vector<32x128xf32> -> vector<32x128xf32>
    %41 = arith.addf %35, %40 : vector<32x128xf32>
    %c0_20 = arith.constant 0 : index
    %c0_21 = arith.constant 0 : index
    %42 = vector.load %arg4[%c0_20, %c0_21] : memref<1x128xf32, #tpu.memory_space<vmem>>, vector<1x128xf32>
    %43 = vector.broadcast %42 : vector<1x128xf32> to vector<32x128xf32>
    %44 = arith.addf %41, %43 : vector<32x128xf32>
    %cst_22 = arith.constant 0.000000e+00 : f32
    %45 = vector.broadcast %cst_22 : f32 to vector<32x128xf32>
    %46 = arith.maximumf %44, %45 : vector<32x128xf32>
    %47 = vector.shape_cast %46 : vector<32x128xf32> to vector<2x16x128xf32>
    %c0_23 = arith.constant 0 : index
    %c0_24 = arith.constant 0 : index
    %c0_25 = arith.constant 0 : index
    %48 = vector.load %arg5[%c0_23, %c0_24, %c0_25] : memref<1x16x128xf32, #tpu.memory_space<vmem>>, vector<1x16x128xf32>
    %49 = vector.broadcast %48 : vector<1x16x128xf32> to vector<2x16x128xf32>
    %50 = arith.mulf %47, %49 : vector<2x16x128xf32>
    %cst_26 = arith.constant dense<0xFF800000> : vector<2x128xf32>
    %51 = vector.multi_reduction <maximumf>, %50, %cst_26 [1] : vector<2x16x128xf32> to vector<2x128xf32>
    %52 = arith.truncf %51 : vector<2x128xf32> to vector<2x128xbf16>
    %c0_27 = arith.constant 0 : index
    %c0_28 = arith.constant 0 : index
    %53 = vector.load %arg6[%c0_27, %c0_28] : memref<128x128xbf16, #tpu.memory_space<vmem>>, vector<128x128xbf16>
    %cst_29 = arith.constant dense<0.000000e+00> : vector<2x128xf32>
    %54 = tpu.matmul %52, %53, %cst_29 {dimension_numbers = #tpu.dot_dimension_numbers<[1], [0], [0], [1], [0, 0, 1, 1], [], []>} : vector<2x128xbf16>, vector<128x128xbf16>, vector<2x128xf32> -> vector<2x128xf32>
    %c0_30 = arith.constant 0 : index
    %c0_31 = arith.constant 0 : index
    %55 = vector.load %arg7[%c0_30, %c0_31] : memref<1x128xf32, #tpu.memory_space<vmem>>, vector<1x128xf32>
    %56 = vector.broadcast %55 : vector<1x128xf32> to vector<2x128xf32>
    %57 = arith.addf %54, %56 : vector<2x128xf32>
    %cst_32 = arith.constant 0.000000e+00 : f32
    %58 = vector.broadcast %cst_32 : f32 to vector<2x128xf32>
    %59 = arith.maximumf %57, %58 : vector<2x128xf32>
    %60 = arith.truncf %59 : vector<2x128xf32> to vector<2x128xbf16>
    %c0_33 = arith.constant 0 : index
    %c0_34 = arith.constant 0 : index
    %61 = vector.load %arg8[%c0_33, %c0_34] : memref<128x128xbf16, #tpu.memory_space<vmem>>, vector<128x128xbf16>
    %cst_35 = arith.constant dense<0.000000e+00> : vector<2x128xf32>
    %62 = tpu.matmul %60, %61, %cst_35 {dimension_numbers = #tpu.dot_dimension_numbers<[1], [0], [0], [1], [0, 0, 1, 1], [], []>} : vector<2x128xbf16>, vector<128x128xbf16>, vector<2x128xf32> -> vector<2x128xf32>
    %c0_36 = arith.constant 0 : index
    %c0_37 = arith.constant 0 : index
    %63 = vector.load %arg9[%c0_36, %c0_37] : memref<1x128xf32, #tpu.memory_space<vmem>>, vector<1x128xf32>
    %64 = vector.broadcast %63 : vector<1x128xf32> to vector<2x128xf32>
    %65 = arith.addf %62, %64 : vector<2x128xf32>
    %cst_38 = arith.constant 0.000000e+00 : f32
    %66 = vector.broadcast %cst_38 : f32 to vector<2x128xf32>
    %67 = arith.subf %66, %65 : vector<2x128xf32>
    %68 = math.exp %67 : vector<2x128xf32>
    %cst_39 = arith.constant 1.000000e+00 : f32
    %69 = vector.broadcast %cst_39 : f32 to vector<2x128xf32>
    %70 = arith.addf %69, %68 : vector<2x128xf32>
    %71 = tpu.reciprocal %70 {approx = true} : vector<2x128xf32> -> vector<2x128xf32>
    %c0_40 = arith.constant 0 : index
    %c0_41 = arith.constant 0 : index
    %72 = vector.load %arg10[%c0_40, %c0_41] : memref<2x128xf32, #tpu.memory_space<vmem>>, vector<2x128xf32>
    tpu.vector_store %arg10[%c0_40, %c0_41], %71 {strides = array<i32>} : memref<2x128xf32, #tpu.memory_space<vmem>>, vector<2x128xf32>,
    return
  }
  func.func @transform_0(%arg0: i32) -> (i32, i32) {
    %c0_i32 = arith.constant 0 : i32
    %c0_i32_0 = arith.constant 0 : i32
    return %arg0, %c0_i32 : i32, i32
  }
  func.func @transform_1(%arg0: i32) -> (i32, i32) {
    %c0_i32 = arith.constant 0 : i32
    %c0_i32_0 = arith.constant 0 : i32
    %c0_i32_1 = arith.constant 0 : i32
    return %c0_i32, %c0_i32_0 : i32, i32
  }
  func.func @transform_2(%arg0: i32) -> (i32, i32, i32) {
    %c0_i32 = arith.constant 0 : i32
    %c0_i32_0 = arith.constant 0 : i32
    %c0_i32_1 = arith.constant 0 : i32
    %c0_i32_2 = arith.constant 0 : i32
    return %c0_i32, %c0_i32_0, %c0_i32_1 : i32, i32, i32
  }
  func.func @transform_3(%arg0: i32) -> (i32, i32) {
    %c0_i32 = arith.constant 0 : i32
    %c0_i32_0 = arith.constant 0 : i32
    %c0_i32_1 = arith.constant 0 : i32
    return %c0_i32, %c0_i32_0 : i32, i32
  }
  func.func @transform_4(%arg0: i32) -> (i32, i32, i32) {
    %c0_i32 = arith.constant 0 : i32
    %c0_i32_0 = arith.constant 0 : i32
    %c0_i32_1 = arith.constant 0 : i32
    %c0_i32_2 = arith.constant 0 : i32
    return %c0_i32, %c0_i32_0, %c0_i32_1 : i32, i32, i32
  }
  func.func @transform_5(%arg0: i32) -> (i32, i32) {
    %c0_i32 = arith.constant 0 : i32
    %c0_i32_0 = arith.constant 0 : i32
    %c0_i32_1 = arith.constant 0 : i32
    return %c0_i32, %c0_i32_0 : i32, i32
  }
  func.func @transform_6(%arg0: i32) -> (i32, i32) {
    %c0_i32 = arith.constant 0 : i32
    %c0_i32_0 = arith.constant 0 : i32
    %c0_i32_1 = arith.constant 0 : i32
    return %c0_i32, %c0_i32_0 : i32, i32
  }
  func.func @transform_7(%arg0: i32) -> (i32, i32) {
    %c0_i32 = arith.constant 0 : i32
    %c0_i32_0 = arith.constant 0 : i32
    %c0_i32_1 = arith.constant 0 : i32
    return %c0_i32, %c0_i32_0 : i32, i32
  }
  func.func @transform_8(%arg0: i32) -> (i32, i32) {
    %c0_i32 = arith.constant 0 : i32
    %c0_i32_0 = arith.constant 0 : i32
    %c0_i32_1 = arith.constant 0 : i32
    return %c0_i32, %c0_i32_0 : i32, i32
  }
  func.func @transform_9(%arg0: i32) -> (i32, i32) {
    %c0_i32 = arith.constant 0 : i32
    %c0_i32_0 = arith.constant 0 : i32
    return %arg0, %c0_i32 : i32, i32
  }
}

</mosaic_0001>

<bundles_post_ra>
// kernel: cnn_forward.1
= control target key start
LH: loop header
LB: loop body
LE: loop exit
PB: predicated region body
PF: predicated region fallthrough
CT: control target
= control target key end

     0   :  { %14 = vsyncpa [#allocation3], 0  ;;  %s2163_s0 = inlined_call_operand.vmem [shape: s32[40,1], index: 0, kind: input, shape index: {}]   ;;  %s2164_s1 = inlined_call_operand.vmem [shape: bf16[128,32], index: 1, kind: input, shape index: {}]   ;;  %s2165_s2 = inlined_call_operand.vmem [shape: bf16[5,32,128], index: 2, kind: input, shape index: {}]   ;;  %s2166_s3 = inlined_call_operand.vmem [shape: f32[1,128], index: 3, kind: input, shape index: {}]   ;;  %s2167_s4 = inlined_call_operand.hbm [shape: f32[1,16,128], index: 4, kind: input, shape index: {}]   ;;  %s2168_s5 = inlined_call_operand.vmem [shape: bf16[128,128], index: 5, kind: input, shape index: {}]   ;;  %s2169_s6 = inlined_call_operand.vmem [shape: f32[1,128], index: 6, kind: input, shape index: {}]   ;;  %s2170_s7 = inlined_call_operand.hbm [shape: bf16[128,128], index: 7, kind: input, shape index: {}]   ;;  %s2171_s8 = inlined_call_operand.vmem [shape: f32[1,128], index: 8, kind: input, shape index: {}]   ;;  %s2172_s9 = inlined_call_operand.hbm [shape: f32[2,128], index: 9, kind: output, shape index: {}]  }
   0x1   :  { %15 = vsyncpa [#allocation6], 0 }
   0x2   :  { %16 = vsyncpa [#allocation4], 0  ;;  %s1653_s30 = smov [#allocation2]   ;;  %s1581_s13 = scalar_lea.hbm %s2167_s4, 256 }
   0x3   :  { %s30_s10 = sshll.u32 %s1653_s30, 4  ;;  %p1582_p0 = scmp.ne.s32.totalorder %s2167_s4, %s1581_s13  ;;  %s31_s10 = int_to_ptr.vmem [resolvable:$true] %s30_s10 }
   0x4   :  { %p1585_p1 = scmp.lt.u32.totalorder %s1581_s13, %s2167_s4 }
   0x6   :  { %p1587_p2 = pnand %p1585_p1, %p1582_p0 }
   0x8   :  { %1590 = shalt.err (!%p1587_p2)
}
   0x9   :  { %s1591_s18 = scalar_lea.vmem %s31_s10, 256  ;;  %p1596_p4 = scmp.lt.s32.totalorder %s31_s10, %s31_s10 }
   0xa   :  { %p1592_p3 = scmp.ne.s32.totalorder %s31_s10, %s1591_s18  ;;  %p1597_p5 = scmp.lt.s32.totalorder %s1591_s18, %s1591_s18 }
   0xc   :  { %p1598_p6 = por %p1597_p5, %p1596_p4 }
   0xe   :  { %p1599_p7 = pnand %p1598_p6, %p1592_p3 }
  0x10   :  { %1602 = shalt.err (!%p1599_p7)
}
  0x11   :  { %s1654_s19 = smov 128   ;;  %s1655_s20 = smov 8  }
  0x12   :  { %36 = dma.hbm_to_vmem [thread:$0]  %s2167_s4, 256, %s31_s10, [#allocation3], %s1654_s19, %s1654_s19, %s1655_s20  }
  0x13   :  { %s1656_s23 = smov [#allocation5]   ;;  %s1603_s27 = scalar_lea.hbm %s2170_s7, 1024 }
  0x14   :  { %s46_s24 = sshll.u32 %s1656_s23, 4  ;;  %p1604_p8 = scmp.ne.s32.totalorder %s2170_s7, %s1603_s27  ;;  %s47_s24 = int_to_ptr.vmem [resolvable:$true] %s46_s24 }
  0x15   :  { %p1607_p9 = scmp.lt.u32.totalorder %s1603_s27, %s2170_s7 }
  0x17   :  { %p1609_p10 = pnand %p1607_p9, %p1604_p8 }
  0x19   :  { %1612 = shalt.err (!%p1609_p10)
}
  0x1a   :  { %s1613_s12 = scalar_lea.vmem %s47_s24, 1024  ;;  %p1618_p12 = scmp.lt.s32.totalorder %s47_s24, %s47_s24 }
  0x1b   :  { %p1614_p11 = scmp.ne.s32.totalorder %s47_s24, %s1613_s12  ;;  %p1619_p13 = scmp.lt.s32.totalorder %s1613_s12, %s1613_s12 }
  0x1d   :  { %p1620_p0 = por %p1619_p13, %p1618_p12 }
  0x1f   :  { %p1621_p1 = pnand %p1620_p0, %p1614_p11 }
  0x21   :  { %1624 = shalt.err (!%p1621_p1)
}
  0x22   :  { %s1657_s4 = smov 64   ;;  %s1658_s10 = smov 4  }
  0x23   :  { %52 = dma.hbm_to_vmem [thread:$0]  %s2170_s7, 1024, %s47_s24, [#allocation6], %s1657_s4, %s1657_s4, %s1658_s10  }
  0x24   :  { %1647 = dma.done.wait [#allocation3], 256  }
  0x25   :  { %1648 = vsyncadd [#allocation3], 4294967040 }
  0x26   :  { %1649 = dma.done.wait [#allocation6], 1024  }
  0x27   :  { %1650 = vsyncadd [#allocation6], 4294966272  ;;  %v1659_v0 = vmov 0   ;;  %v1660_v1 = vmov 0.0   ;;  %v62_v2 = vld [vmem:[%s2163_s0] sm:$0xff]  ;;  %v64_v3 = vld [vmem:[%s2163_s0 + $0x10] sm:$0xff]  ;;  %v67_v15 = vlaneseq }
  0x28   :  { %1541 = vset.pattern.permute.xlu0 %v1659_v0  ;;  %1542 = vset.pattern.permute.xlu1 %v1659_v0  ;;  %v63_v4 = vld [vmem:[%s2163_s0 + $0x8] sm:$0xff]  ;;  %v65_v5 = vld [vmem:[%s2163_s0 + $0x18] sm:$0xff]  ;;  %v1543_v6 = vld [vmem:[%s2164_s1] sm:$0xff]   ;;  %vm1661_vm0 = vmmov 0   ;;  %v1662_v20 = vmov 1.0|1.0  }
  0x29   :  { %1405 = vmatprep.subr.bf16.mxu0 %v1660_v1  ;;  %70 = vperm.xlu0 %1541, %v62_v2   ;;  %v1544_v7 = vld [vmem:[%s2164_s1 + $0x8] sm:$0xff]   ;;  %v66_v8 = vld [vmem:[%s2163_s0 + $0x20] sm:$0xff]  ;;  %v1545_v9 = vld [vmem:[%s2164_s1 + $0x10] sm:$0xff]   ;;  %v68_v17 = vand.u32 127, %v67_v15  ;;  %v1663_v26 = vmov 1983009808  }
  0x2a   :  { %76 = vperm.xlu1 %1542, %v64_v3   ;;  %1406 = vmatpush3.bf16.msra.mxu0 %v1543_v6  ;;  %v1546_v10 = vld [vmem:[%s2164_s1 + $0x18] sm:$0xff]   ;;  %v1547_v11 = vld [vmem:[%s2164_s1 + $0x20] sm:$0xff]   ;;  %v1548_v12 = vld [vmem:[%s2164_s1 + $0x28] sm:$0xff]   ;;  %v230_v27 = vunpack.c.l.s4 %v1663_v26  ;;  %v233_v29 = vshrl.u32 %v67_v15, 7  ;;  %vm274_vm9 = vsmask.f32 1280 }
  0x2b   :  { %1407 = vmatprep.subr.bf16.mxu0 %v1660_v1  ;;  %1421 = vmatprep.mubr.msk.bf16.mxu0 %vm1661_vm0, %v1660_v1  ;;  %v1549_v13 = vld [vmem:[%s2164_s1 + $0x30] sm:$0xff]   ;;  %v1550_v14 = vld [vmem:[%s2164_s1 + $0x38] sm:$0xff]   ;;  %v1804_v25 = vld [vmem:[%s2165_s2] sm:$0xff]   ;;  %vm275_vm10 = vsmask.f32 3336 }
  0x2c   :  { %v1551_v23 = vld [vmem:[%s2165_s2 + $0x10] sm:$0xff]   ;;  %v1552_v24 = vld [vmem:[%s2165_s2 + $0x18] sm:$0xff]   ;;  %v231_v28 = vunpack.c.0.s8 %v230_v27  ;;  %vm277_vm11 = vsmask.f32 5392  ;;  %vm279_vm12 = vsmask.f32 7448  ;;  %vm276_vm13 = vmor %vm274_vm9, %vm275_vm10 }
  0x2d   :  { %73 = vperm.xlu0 %1541, %v63_v4   ;;  %1433 = vmatprep.subr.bf16.mxu1 %v1551_v23  ;;  %vm1835_vm14 = vmor %vm276_vm13, %vm277_vm11  ;;  %vm725_vm10 = vsmask.f32 6424 }
  0x2e   :  { %79 = vperm.xlu1 %1542, %v65_v5   ;;  %1408 = vmatpush3.bf16.msra.mxu0 %v1544_v7  ;;  %v1807_v31 = vsub.s32 %v231_v28, %v233_v29  ;;  %vm1849_vm15 = vmor %vm1835_vm14, %vm279_vm12 }
  0x2f   :  { %1409 = vmatprep.subr.bf16.mxu0 %v1660_v1  ;;  %1434 = vmatpush3.bf16.msra.mxu1 %v1551_v23 }
  0x30   :  { %1435 = vmatprep.subr.bf16.mxu1 %v1552_v24 }
  0x31   :  { %82 = vperm.xlu0 %1541, %v66_v8  }
  0x32   :  { %1410 = vmatpush3.bf16.msra.mxu0 %v1545_v9 }
  0x33   :  { %1411 = vmatprep.subr.bf16.mxu0 %v1660_v1  ;;  %1436 = vmatpush3.bf16.msra.mxu1 %v1552_v24 }
  0x34   :  { %1441 = vmatprep.subr.bf16.mxu1 %v1804_v25 }
  0x36   :  { %1412 = vmatpush3.bf16.msra.mxu0 %v1546_v10 }
  0x37   :  { %1413 = vmatprep.subr.bf16.mxu0 %v1660_v1 }
  0x3a   :  { %1414 = vmatpush3.bf16.msra.mxu0 %v1547_v11 }
  0x3b   :  { %1415 = vmatprep.subr.bf16.mxu0 %v1660_v1 }
  0x3e   :  { %1416 = vmatpush3.bf16.msra.mxu0 %v1548_v12 }
  0x3f   :  { %1417 = vmatprep.subr.bf16.mxu0 %v1660_v1 }
  0x42   :  { %1418 = vmatpush3.bf16.msra.mxu0 %v1549_v13 }
  0x43   :  { %1419 = vmatprep.subr.bf16.mxu0 %v1660_v1 }
  0x46   :  { %1420 = vmatpush3.bf16.msra.mxu0 %v1550_v14 }
  0x47   :  { %1473 = vmatprep.subr.bf16.mxu0 %v1660_v1 }
  0xa8   :  { %v71_v16 = vpop.permute.xlu0 %70 }
  0xa9   :  { %v77_v18 = vpop.permute.xlu1 %76  ;;  %vm84_vm1 = vcmp.eq.s32.totalorder %v68_v17, %v71_v16 }
  0xaa   :  { %vm86_vm4 = vcmp.eq.s32.totalorder %v68_v17, %v77_v18 }
  0xac   :  { %v74_v19 = vpop.permute.xlu0 %73 }
  0xad   :  { %vm85_vm2 = vcmp.eq.s32.totalorder %v68_v17, %v74_v19  ;;  %v80_v21 = vpop.permute.xlu1 %79 }
  0xae   :  { %vm1289_vm3 = vmpackc.low %vm85_vm2, %vm84_vm1  ;;  %vm87_vm5 = vcmp.eq.s32.totalorder %v68_v17, %v80_v21  ;;  %vm577_vm1 = vcmask 1040384   ;;  %vm578_vm2 = vcmask 1042434  }
  0xaf   :  { %1422 = vmatmul.mubr.msk.bf16.vlgmr.msra.gmra.mrb[0].mxu0 %vm1289_vm3, %v1662_v20  ;;  %vm1291_vm6 = vmpackc.low %vm87_vm5, %vm86_vm4  ;;  %vm420_vm3 = vcmask 261120   ;;  %vm580_vm4 = vcmask 1044484   ;;  %vm720_vm5 = vsmask.f32 256 }
  0xb0   :  { %1425 = vmatprep.mubr.msk.bf16.mxu0 %vm1661_vm0, %v1660_v1  ;;  %v83_v22 = vpop.permute.xlu0 %82  ;;  %vm1918_vm9 = vmor %vm577_vm1, %vm578_vm2 }
  0xb1   :  { %vm88_vm7 = vcmp.eq.s32.totalorder %v68_v17, %v83_v22  ;;  %vm581_vm11 = vmor %vm1918_vm9, %vm580_vm4 }
  0xb2   :  { %vm1293_vm8 = vmpackc.low %vm88_vm7, %vm88_vm7  ;;  %vm582_vm7 = vcmask 1046534  }
  0xb3   :  { %vm1965_vm13 = vmor %vm581_vm11, %vm582_vm7 }
  0xb7   :  { %1426 = vmatmul.mubr.msk.bf16.gmra.mrb[4].mxu0 %vm1291_vm6, %v1662_v20  ;;  %vm721_vm6 = vsmask.f32 2312 }
  0xb8   :  { %1429 = vmatprep.mubr.msk.bf16.mxu0 %vm1661_vm0, %v1660_v1  ;;  %vm722_vm12 = vmor %vm720_vm5, %vm721_vm6 }
  0xbf   :  { %1430 = vmatmul.mubr.msk.bf16.gmra.mrb[8].mxu0 %vm1293_vm8, %v1662_v20  ;;  %vm723_vm8 = vsmask.f32 4368 }
  0xc0   :  { %1489 = vmatprep.mubr.msk.bf16.mxu0 %vm1661_vm0, %v1660_v1  ;;  %vm724_vm14 = vmor %vm722_vm12, %vm723_vm8 }
 0x182   :  { %v200_v30 = vpop.f32.mrb[0].mxu0 }
 0x183   :  { %v1423_v32 = vpop.f32.mrb[1].mxu0 }
 0x184   :  { %v203_v33 = vpop.f32.mrb[2].mxu0 }
 0x185   :  { %v222_v34 = vpack.c.bf16 %v203_v33, %v200_v30  ;;  %v1295_v35 = vpack.c.bf16 %v203_v33, %v203_v33  ;;  %v1424_v36 = vpop.f32.mrb[3].mxu0 }
 0x187   :  { %v1810_v37 = vrot.slane %v222_v34, %v1807_v31  ;;  %v1813_v38 = vrot.slane %v1295_v35, %v1807_v31 }
 0x189   :  { %v1817_v39 = vcombine.high %v1810_v37, %v1810_v37  ;;  %v1821_v40 = vcombine.high %v1813_v38, %v1813_v38  ;;  %v1309_v41 = vrot.slane %v1810_v37, 9  ;;  %v282_v42 = vshrl.u32 %v1810_v37, 16 }
 0x18a   :  { %v208_v43 = vpop.f32.mrb[4].mxu0  ;;  %v285_v44 = vshll.u32 %v1810_v37, 16  ;;  %v301_v45 = vshll.u32 %v1813_v38, 16  ;;  %v305_v46 = vshrl.u32 %v1813_v38, 16  ;;  %v589_v47 = vrot.slane %v1813_v38, 7 }
 0x18b   :  { %v1427_v48 = vpop.f32.mrb[5].mxu0  ;;  %v284_v49 = vrot.slane %v282_v42, 6  ;;  %v291_v50 = vshll.u32 %v1817_v39, 16  ;;  %v295_v51 = vshrl.u32 %v1817_v39, 16  ;;  %v311_v52 = vshll.u32 %v1821_v40, 16 }
 0x18c   :  { %v211_v53 = vpop.f32.mrb[6].mxu0  ;;  %v287_v55 = vrot.slane %v285_v44, 7  ;;  %v303_v56 = vrot.slane %v301_v45, 7  ;;  %v307_v57 = vrot.slane %v305_v46, 6  ;;  %v315_v58 = vshrl.u32 %v1821_v40, 16 }
 0x18d   :  { %v223_v59 = vpack.c.bf16 %v211_v53, %v208_v43  ;;  %v1296_v60 = vpack.c.bf16 %v211_v53, %v211_v53  ;;  %v1428_v61 = vpop.f32.mrb[7].mxu0  ;;  %v293_v62 = vrot.slane %v291_v50, 7  ;;  %v297_v63 = vrot.slane %v295_v51, 6 }
 0x18e   :  { %v288_v0 = vor.u32 %v287_v55, %v284_v49  ;;  %v308_v2 = vor.u32 %v307_v57, %v303_v56  ;;  %v313_v3 = vrot.slane %v311_v52, 7  ;;  %v317_v4 = vrot.slane %v315_v58, 6 }
 0x18f   :  { %v1841_v5 = vrot.slane %v223_v59, %v1807_v31  ;;  %v1844_v6 = vrot.slane %v1296_v60, %v1807_v31  ;;  %v298_v8 = vor.u32 %v297_v63, %v293_v62  ;;  %v1853_v9 = vrot.slane %v295_v51, 7 }
 0x190   :  { %v289_v10 = vrot.slane %v288_v0, 2  ;;  %v309_v11 = vrot.slane %v308_v2, 2  ;;  %v318_v12 = vor.u32 %v317_v4, %v313_v3  ;;  %v1855_v13 = vrot.slane %v305_v46, 7 }
 0x191   :  { %v1859_v14 = vcombine.high %v1841_v5, %v1841_v5  ;;  %v1863_v15 = vcombine.high %v1844_v6, %v1844_v6  ;;  %v595_v16 = vrot.slane %v1841_v5, 7  ;;  %v741_v17 = vshrl.u32 %v1841_v5, 16 }
 0x192   :  { %v216_v18 = vpop.f32.mrb[8].mxu0  ;;  %v294_v19 = vsel %vm1849_vm15, %v289_v10, %v293_v62  ;;  %v299_v20 = vrot.slane %v298_v8, 2  ;;  %v314_v21 = vsel %vm1849_vm15, %v309_v11, %v313_v3  ;;  %v319_v22 = vrot.slane %v318_v12, 2 }
 0x193   :  { %v743_v23 = vrot.slane %v741_v17, 7  ;;  %v224_v24 = vpack.c.bf16 %v216_v18, %v216_v18  ;;  %v1431_v26 = vpop.f32.mrb[9].mxu0  ;;  %v321_v27 = vshll.u32 %v1841_v5, 16  ;;  %v1873_v28 = vor.u32 %v1853_v9, %v291_v50 }
 0x194   :  { %v219_v29 = vpop.f32.mrb[10].mxu0  ;;  %v304_v30 = vsel %vm1849_vm15, %v299_v20, %v303_v56  ;;  %v1878_v32 = vor.u32 %v1855_v13, %v301_v45  ;;  %v1880_v33 = vrot.slane %v315_v58, 7  ;;  %v326_v34 = vshrl.u32 %v1859_v14, 16 }
 0x195   :  { %v1884_v35 = vrot.slane %v224_v24, %v1807_v31  ;;  %v1432_v36 = vpop.f32.mrb[11].mxu0  ;;  %v323_v43 = vrot.slane %v321_v27, 7  ;;  %v374_v44 = vcombine.low %v294_v19, %v304_v30  ;;  %v1886_v46 = vor.u32 %v743_v23, %v321_v27 }
 0x196   :  { %v1889_v48 = vor.u32 %v1880_v33, %v311_v52  ;;  %v328_v45 = vrot.slane %v326_v34, 6  ;;  %v329_v49 = vshll.u32 %v1859_v14, 16  ;;  %v335_v50 = vshll.u32 %v1844_v6, 16 }
 0x197   :  { %v1897_v51 = vcombine.high %v1884_v35, %v1884_v35  ;;  %v359_v53 = vshrl.u32 %v1884_v35, 16  ;;  %v605_v54 = vrot.slane %v1884_v35, 7  ;;  %v324_v55 = vsel %vm1849_vm15, %v319_v22, %v323_v43 }
 0x198   :  { %v375_v52 = vcombine.low %v314_v21, %v324_v55  ;;  %v382_v56 = vrot.slane %v374_v44, %v1807_v31  ;;  %v331_v57 = vrot.slane %v329_v49, 7  ;;  %v337_v58 = vrot.slane %v335_v50, 7 }
 0x199   :  { %v1904_v59 = vrot.slane %v359_v53, 7  ;;  %v339_v60 = vshrl.u32 %v1844_v6, 16  ;;  %v345_v61 = vshll.u32 %v1863_v15, 16  ;;  %v349_v62 = vshrl.u32 %v1863_v15, 16 }
 0x19a   :  { %v389_v63 = vrot.slane %v375_v52, %v1807_v31  ;;  %v332_v0 = vor.u32 %v331_v57, %v328_v45  ;;  %v355_v2 = vshll.u32 %v1884_v35, 16  ;;  %v361_v3 = vrot.slane %v359_v53, 6 }
 0x19b   :  { %v341_v4 = vrot.slane %v339_v60, 6  ;;  %v347_v8 = vrot.slane %v345_v61, 7  ;;  %v351_v10 = vrot.slane %v349_v62, 6  ;;  %v365_v11 = vshll.u32 %v1897_v51, 16 }
 0x19c   :  { %v390_v12 = vcombine.low %v382_v56, %v389_v63  ;;  %v333_v17 = vrot.slane %v332_v0, 2  ;;  %v357_v18 = vrot.slane %v355_v2, 7  ;;  %v1912_v19 = vrot.slane %v339_v60, 7 }
 0x19d   :  { %v342_v20 = vor.u32 %v341_v4, %v337_v58  ;;  %v352_v21 = vor.u32 %v351_v10, %v347_v8  ;;  %v367_v22 = vrot.slane %v365_v11, 7  ;;  %v1914_v23 = vrot.slane %v349_v62, 7 }
 0x19e   :  { %1437 = vmatprep.mubr.msk.bf16.mxu1 %vm420_vm3, %v390_v12  ;;  %v338_v26 = vsel %vm1849_vm15, %v333_v17, %v337_v58  ;;  %v362_v27 = vor.u32 %v361_v3, %v357_v18  ;;  %v1926_v29 = vor.u32 %v1912_v19, %v335_v50  ;;  %v1929_v30 = vor.u32 %v1904_v59, %v355_v2 }
 0x19f   :  { %v343_v36 = vrot.slane %v342_v20, 2  ;;  %v353_v43 = vrot.slane %v352_v21, 2  ;;  %v1932_v44 = vor.u32 %v1914_v23, %v345_v61  ;;  %v760_v45 = vshrl.u32 %v1897_v51, 16 }
 0x1a0   :  { %v363_v49 = vrot.slane %v362_v27, 2  ;;  %v476_v53 = vcombine.low %v1810_v37, %v1817_v39  ;;  %v477_v55 = vcombine.low %v1813_v38, %v1821_v40  ;;  %v493_v50 = vcombine.low %v1859_v14, %v1844_v6  ;;  %v1555_v37 = vld [vmem:[%s2165_s2 + $0x20] sm:$0xff]  }
 0x1a1   :  { %v348_v52 = vsel %vm1849_vm15, %v343_v36, %v347_v8  ;;  %v358_v56 = vsel %vm1849_vm15, %v353_v43, %v357_v18  ;;  %v762_v57 = vrot.slane %v760_v45, 7  ;;  %v494_v58 = vcombine.low %v1863_v15, %v1884_v35  ;;  %v1554_v43 = vld [vmem:[%s2165_s2 + $0x8] sm:$0xff]  }
 0x1a2   :  { %v368_v60 = vsel %vm1849_vm15, %v363_v49, %v367_v22  ;;  %v391_v61 = vcombine.low %v338_v26, %v348_v52  ;;  %v484_v62 = vrot.slane %v476_v53, %v1807_v31  ;;  %v491_v63 = vrot.slane %v477_v55, %v1807_v31  ;;  %vm1999_vm15 = vmor %vm724_vm14, %vm725_vm10 }
 0x1a3   :  { %v392_v0 = vcombine.low %v358_v56, %v368_v60  ;;  %v1956_v2 = vor.u32 %v762_v57, %v365_v11  ;;  %v1959_v3 = vrot.slane %v493_v50, %v1807_v31  ;;  %v1962_v4 = vrot.slane %v494_v58, %v1807_v31  ;;  %v1570_v56 = vld [vmem:[#allocation5 + $0x8] sm:$0xff]  }
 0x1a4   :  { %v399_v8 = vrot.slane %v391_v61, %v1807_v31  ;;  %v492_v10 = vcombine.low %v484_v62, %v491_v63  ;;  %v586_v12 = vrot.slane %v1817_v39, 7  ;;  %v591_v11 = vrot.slane %v589_v47, 2 }
 0x1a5   :  { %v406_v17 = vrot.slane %v392_v0, %v1807_v31  ;;  %v509_v18 = vcombine.low %v1959_v3, %v1962_v4  ;;  %v592_v20 = vrot.slane %v1821_v40, 7  ;;  %v1310_v21 = vrot.slane %v1859_v14, 9  ;;  %v1558_v3 = vld [vmem:[%s2165_s2 + $0x38] sm:$0xff]   ;;  %v1560_v4 = vld [vmem:[%s2165_s2 + $0x48] sm:$0xff]  }
 0x1a6   :  { %v587_v22 = vsel %vm1965_vm13, %v1309_v41, %v586_v12  ;;  %v588_v24 = vrot.slane %v586_v12, 2  ;;  %v599_v26 = vrot.slane %v1844_v6, 7  ;;  %v602_v27 = vrot.slane %v1863_v15, 7 }
 0x1a7   :  { %v407_v36 = vcombine.low %v399_v8, %v406_v17  ;;  %v593_v45 = vsel %vm1965_vm13, %v591_v11, %v592_v20  ;;  %v594_v49 = vrot.slane %v592_v20, 2  ;;  %v607_v53 = vrot.slane %v605_v54, 2 }
 0x1a8   :  { %v590_v41 = vsel %vm1965_vm13, %v588_v24, %v589_v47  ;;  %v600_v55 = vsel %vm1965_vm13, %v1310_v21, %v599_v26  ;;  %v601_v50 = vrot.slane %v599_v26, 2  ;;  %v604_v52 = vrot.slane %v602_v27, 2 }
 0x1a9   :  { %1438 = vmatmul.mubr.msk.bf16.vlgmr.msra.gmra.mrb[0].mxu1 %vm420_vm3, %v407_v36  ;;  %v596_v57 = vsel %vm1965_vm13, %v594_v49, %v595_v16  ;;  %v615_v58 = vcombine.low %v587_v22, %v590_v41  ;;  %v608_v47 = vrot.slane %v1897_v51, 7  ;;  %v1319_v60 = vrot.slane %v282_v42, 9  ;;  %v1562_v41 = vld [vmem:[%s2168_s5 + $0x8] sm:$0xff]  }
 0x1aa   :  { %1442 = vmatpush3.bf16.msra.mxu1 %v1804_v25  ;;  %1445 = vmatprep.mubr.msk.bf16.mxu1 %vm420_vm3, %v492_v10  ;;  %v616_v61 = vcombine.low %v593_v45, %v596_v57  ;;  %v603_v62 = vsel %vm1965_vm13, %v601_v50, %v602_v27  ;;  %v606_v63 = vsel %vm1965_vm13, %v604_v52, %v605_v54  ;;  %v732_v16 = vrot.slane %v1853_v9, 2  ;;  %v1569_v50 = vld [vmem:[#allocation5] sm:$0xff]   ;;  %v1564_v52 = vld [vmem:[%s2168_s5 + $0x18] sm:$0xff]   ;;  %v1565_v57 = vld [vmem:[%s2168_s5 + $0x20] sm:$0xff]  }
 0x1ab   :  { %1443 = vmatprep.subr.bf16.mxu1 %v1554_v43  ;;  %v623_v25 = vrot.slane %v615_v58, %v1807_v31  ;;  %v609_v42 = vsel %vm1965_vm13, %v607_v53, %v608_v47  ;;  %v632_v0 = vcombine.low %v600_v55, %v603_v62  ;;  %v731_v8 = vsel %vm1999_vm15, %v1319_v60, %v1873_v28  ;;  %v1563_v55 = vld [vmem:[%s2168_s5 + $0x10] sm:$0xff]   ;;  %v1571_v58 = vld [vmem:[#allocation5 + $0x10] sm:$0xff]   ;;  %v1566_v47 = vld [vmem:[%s2168_s5 + $0x28] sm:$0xff]  }
 0x1ac   :  { %v630_v10 = vrot.slane %v616_v61, %v1807_v31  ;;  %v633_v54 = vcombine.low %v606_v63, %v609_v42  ;;  %v735_v9 = vsel %vm1999_vm15, %v732_v16, %v1878_v32  ;;  %v736_v12 = vrot.slane %v1855_v13, 2  ;;  %v1572_v60 = vld [vmem:[#allocation5 + $0x18] sm:$0xff]   ;;  %v1567_v61 = vld [vmem:[%s2168_s5 + $0x30] sm:$0xff]   ;;  %v1568_v63 = vld [vmem:[%s2168_s5 + $0x38] sm:$0xff]  }
 0x1ad   :  { %v640_v11 = vrot.slane %v632_v0, %v1807_v31  ;;  %v740_v17 = vrot.slane %v1880_v33, 2  ;;  %v770_v7 = vcombine.low %v731_v8, %v735_v9  ;;  %v1320_v20 = vrot.slane %v326_v34, 9  ;;  %v1573_v62 = vld [vmem:[#allocation5 + $0x20] sm:$0xff]   ;;  %v1574_v16 = vld [vmem:[#allocation5 + $0x28] sm:$0xff]  }
 0x1ae   :  { %1444 = vmatpush3.bf16.msra.mxu1 %v1554_v43  ;;  %v631_v21 = vcombine.low %v623_v25, %v630_v10  ;;  %v647_v28 = vrot.slane %v633_v54, %v1807_v31  ;;  %v739_v22 = vsel %vm1999_vm15, %v736_v12, %v1889_v48  ;;  %v751_v32 = vrot.slane %v1912_v19, 2 }
 0x1af   :  { %1449 = vmatprep.subr.bf16.mxu1 %v1555_v37  ;;  %v745_v13 = vsel %vm1999_vm15, %v740_v17, %v1886_v46  ;;  %v778_v33 = vrot.slane %v770_v7, %v1807_v31  ;;  %v750_v14 = vsel %vm1999_vm15, %v1320_v20, %v1926_v29  ;;  %v755_v34 = vrot.slane %v1914_v23, 2  ;;  %v1001_v7 = vld [vmem:[#allocation2 + $0x8] sm:$0xff] }
 0x1b0   :  { %v648_v24 = vcombine.low %v640_v11, %v647_v28  ;;  %v771_v26 = vcombine.low %v739_v22, %v745_v13  ;;  %v754_v48 = vsel %vm1999_vm15, %v751_v32, %v1932_v44  ;;  %v759_v19 = vrot.slane %v1904_v59, 2  ;;  %v1000_v11 = vld [vmem:[#allocation2] sm:$0xff] }
 0x1b1   :  { %v758_v46 = vsel %vm1999_vm15, %v755_v34, %v1929_v30  ;;  %v787_v27 = vcombine.low %v750_v14, %v754_v48  ;;  %v880_v36 = vcombine.low %v1817_v39, %v1813_v38  ;;  %v881_v29 = vcombine.low %v1821_v40, %v1841_v5  ;;  %v1556_v30 = vld [vmem:[%s2165_s2 + $0x28] sm:$0xff]  }
 0x1b2   :  { %v785_v23 = vrot.slane %v771_v26, %v1807_v31  ;;  %v764_v43 = vsel %vm1999_vm15, %v759_v19, %v1956_v2  ;;  %v897_v59 = vcombine.low %v1844_v6, %v1863_v15  ;;  %v898_v44 = vcombine.low %v1884_v35, %v1897_v51  ;;  %v1557_v51 = vld [vmem:[%s2165_s2 + $0x30] sm:$0xff]  }
 0x1b3   :  { %v788_v38 = vcombine.low %v758_v46, %v764_v43  ;;  %v795_v39 = vrot.slane %v787_v27, %v1807_v31  ;;  %v888_v40 = vrot.slane %v880_v36, %v1807_v31  ;;  %v895_v5 = vrot.slane %v881_v29, %v1807_v31 }
 0x1b4   :  { %v786_v45 = vcombine.low %v778_v33, %v785_v23  ;;  %v905_v2 = vrot.slane %v897_v59, %v1807_v31  ;;  %v912_v49 = vrot.slane %v898_v44, %v1807_v31 }
 0x1b5   :  { %1446 = vmatmul.mubr.msk.bf16.vlgmr.msra.gmra.mrb[0].mxu1 %vm420_vm3, %v509_v18  ;;  %v802_v6 = vrot.slane %v788_v38, %v1807_v31  ;;  %v896_v15 = vcombine.low %v888_v40, %v895_v5  ;;  %v1559_v31 = vld [vmem:[%s2165_s2 + $0x40] sm:$0xff]  }
 0x1b6   :  { %1450 = vmatpush3.bf16.msra.mxu1 %v1555_v37  ;;  %1453 = vmatprep.mubr.msk.bf16.mxu1 %vm420_vm3, %v631_v21  ;;  %v913_v35 = vcombine.low %v905_v2, %v912_v49  ;;  %v1561_v18 = vld [vmem:[%s2168_s5] sm:$0xff]   ;;  %v1576_v49 = vld [vmem:[#allocation5 + $0x38] sm:$0xff]  }
 0x1b7   :  { %1451 = vmatprep.subr.bf16.mxu1 %v1556_v30  ;;  %v803_v53 = vcombine.low %v795_v39, %v802_v6  ;;  %1474 = vmatpush3.bf16.msra.mxu0 %v1561_v18  ;;  %v1337_v37 = vld [vmem:[%s2166_s3] ss:$0 sm:$0xff] }
 0x1b8   :  { %1475 = vmatprep.subr.bf16.mxu0 %v1660_v1  ;;  %v1575_v2 = vld [vmem:[#allocation5 + $0x30] sm:$0xff]  }
 0x1b9   :  { %v1338_v6 = vld [vmem:[%s2169_s6] ss:$0 sm:$0xff]  ;;  %s1664_s6 = smov [#allocation7]  }
 0x1ba   :  { %1452 = vmatpush3.bf16.msra.mxu1 %v1556_v30  ;;  %v1347_v18 = vld [vmem:[%s2171_s8] ss:$0 sm:$0xff]  ;;  %s1266_s29 = sshll.u32 %s1664_s6, 4  ;;  %s1267_s29 = int_to_ptr.vmem [resolvable:$true] %s1266_s29 }
 0x1bb   :  { %1457 = vmatprep.subr.bf16.mxu1 %v1557_v51  ;;  %1476 = vmatpush3.bf16.msra.mxu0 %v1562_v41  ;;  %s1625_s30 = scalar_lea.vmem %s1267_s29, 32  ;;  %p1630_p3 = scmp.lt.s32.totalorder %s1267_s29, %s1267_s29 }
 0x1bc   :  { %1477 = vmatprep.subr.bf16.mxu0 %v1660_v1  ;;  %p1626_p2 = scmp.ne.s32.totalorder %s1267_s29, %s1625_s30  ;;  %p1631_p4 = scmp.lt.s32.totalorder %s1625_s30, %s1625_s30 }
 0x1be   :  { %p1632_p5 = por %p1631_p4, %p1630_p3 }
 0x1bf   :  { %1478 = vmatpush3.bf16.msra.mxu0 %v1563_v55 }
 0x1c0   :  { %1479 = vmatprep.subr.bf16.mxu0 %v1660_v1  ;;  %p1633_p6 = pnand %p1632_p5, %p1626_p2 }
 0x1c1   :  { %1454 = vmatmul.mubr.msk.bf16.vlgmr.msra.gmra.mrb[0].mxu1 %vm420_vm3, %v648_v24 }
 0x1c2   :  { %1458 = vmatpush3.bf16.msra.mxu1 %v1557_v51  ;;  %1461 = vmatprep.mubr.msk.bf16.mxu1 %vm420_vm3, %v786_v45 }
 0x1c3   :  { %1459 = vmatprep.subr.bf16.mxu1 %v1558_v3  ;;  %1480 = vmatpush3.bf16.msra.mxu0 %v1564_v52 }
 0x1c4   :  { %1481 = vmatprep.subr.bf16.mxu0 %v1660_v1 }
 0x1c6   :  { %1460 = vmatpush3.bf16.msra.mxu1 %v1558_v3 }
 0x1c7   :  { %1465 = vmatprep.subr.bf16.mxu1 %v1559_v31  ;;  %1482 = vmatpush3.bf16.msra.mxu0 %v1565_v57 }
 0x1c8   :  { %1483 = vmatprep.subr.bf16.mxu0 %v1660_v1 }
 0x1cb   :  { %1484 = vmatpush3.bf16.msra.mxu0 %v1566_v47 }
 0x1cc   :  { %1485 = vmatprep.subr.bf16.mxu0 %v1660_v1 }
 0x1cd   :  { %1462 = vmatmul.mubr.msk.bf16.vlgmr.msra.gmra.mrb[0].mxu1 %vm420_vm3, %v803_v53 }
 0x1ce   :  { %1466 = vmatpush3.bf16.msra.mxu1 %v1559_v31  ;;  %1469 = vmatprep.mubr.msk.bf16.mxu1 %vm420_vm3, %v896_v15 }
 0x1cf   :  { %1467 = vmatprep.subr.bf16.mxu1 %v1560_v4  ;;  %1486 = vmatpush3.bf16.msra.mxu0 %v1567_v61 }
 0x1d0   :  { %1487 = vmatprep.subr.bf16.mxu0 %v1660_v1 }
 0x1d2   :  { %1468 = vmatpush3.bf16.msra.mxu1 %v1560_v4 }
 0x1d3   :  { %1493 = vmatprep.subr.bf16.mxu1 %v1660_v1  ;;  %1488 = vmatpush3.bf16.msra.mxu0 %v1568_v63 }
 0x1d9   :  { %1470 = vmatmul.mubr.msk.bf16.vlgmr.msra.gmra.mrb[0].mxu1 %vm420_vm3, %v913_v35 }
 0x1da   :  { %1509 = vmatprep.mubr.msk.bf16.mxu1 %vm1661_vm0, %v1660_v1  ;;  %1494 = vmatpush3.bf16.msra.mxu1 %v1569_v50  ;;  %vm1049_vm0 = vcmask 1041409  }
 0x1db   :  { %1495 = vmatprep.subr.bf16.mxu1 %v1660_v1 }
 0x1de   :  { %1496 = vmatpush3.bf16.msra.mxu1 %v1570_v56 }
 0x1df   :  { %1497 = vmatprep.subr.bf16.mxu1 %v1660_v1 }
 0x1e2   :  { %1498 = vmatpush3.bf16.msra.mxu1 %v1571_v58 }
 0x1e3   :  { %1499 = vmatprep.subr.bf16.mxu1 %v1660_v1 }
 0x1e6   :  { %1500 = vmatpush3.bf16.msra.mxu1 %v1572_v60 }
 0x1e7   :  { %1501 = vmatprep.subr.bf16.mxu1 %v1660_v1 }
 0x1ea   :  { %1502 = vmatpush3.bf16.msra.mxu1 %v1573_v62 }
 0x1eb   :  { %1503 = vmatprep.subr.bf16.mxu1 %v1660_v1 }
 0x1ee   :  { %1504 = vmatpush3.bf16.msra.mxu1 %v1574_v16 }
 0x1ef   :  { %1505 = vmatprep.subr.bf16.mxu1 %v1660_v1 }
 0x1f2   :  { %1506 = vmatpush3.bf16.msra.mxu1 %v1575_v2 }
 0x1f3   :  { %1507 = vmatprep.subr.bf16.mxu1 %v1660_v1 }
 0x1f6   :  { %1508 = vmatpush3.bf16.msra.mxu1 %v1576_v49 }
 0x2ac   :  { %v1471_v25 = vpop.f32.mrb[0].mxu1 }
 0x2ad   :  { %v994_v42 = vadd.f32 %v1471_v25, %v1337_v37  ;;  %v966_v0 = vpop.f32.mrb[1].mxu1 }
 0x2ae   :  { %v992_v8 = vadd.f32 %v1337_v37, %v966_v0  ;;  %v1472_v10 = vpop.f32.mrb[2].mxu1 }
 0x2af   :  { %v998_v54 = vmax.f32 %v994_v42, 0.0  ;;  %v995_v9 = vadd.f32 %v1472_v10, %v1337_v37  ;;  %v969_v12 = vpop.f32.mrb[3].mxu1 }
 0x2b0   :  { %v996_v17 = vmax.f32 %v992_v8, 0.0  ;;  %v993_v20 = vadd.f32 %v1337_v37, %v969_v12 }
 0x2b1   :  { %v999_v21 = vmax.f32 %v995_v9, 0.0  ;;  %v1004_v22 = vmul.f32 %v1000_v11, %v998_v54 }
 0x2b2   :  { %v997_v28 = vmax.f32 %v993_v20, 0.0  ;;  %v1002_v13 = vmul.f32 %v1000_v11, %v996_v17 }
 0x2b3   :  { %v1005_v32 = vmul.f32 %v1001_v7, %v999_v21 }
 0x2b4   :  { %v1003_v33 = vmul.f32 %v1001_v7, %v997_v28 }
 0x2b5   :  { %v1013_v14 = vmax.f32 %v1004_v22, %v1005_v32 }
 0x2b6   :  { %v1006_v34 = vmax.f32 %v1002_v13, %v1003_v33 }
 0x2b7   :  { %v1014_v24 = vrot.slane %v1013_v14, 4 }
 0x2b8   :  { %v1007_v26 = vrot.slane %v1006_v34, 4 }
 0x2b9   :  { %v1015_v48 = vmax.f32 %v1013_v14, %v1014_v24 }
 0x2ba   :  { %v1008_v19 = vmax.f32 %v1006_v34, %v1007_v26 }
 0x2bb   :  { %v1016_v46 = vrot.slane %v1015_v48, 2 }
 0x2bc   :  { %v1009_v27 = vrot.slane %v1008_v19, 2 }
 0x2bd   :  { %v1017_v36 = vmax.f32 %v1015_v48, %v1016_v46 }
 0x2be   :  { %v1010_v29 = vmax.f32 %v1008_v19, %v1009_v27 }
 0x2bf   :  { %v1018_v23 = vrot.slane %v1017_v36, 1 }
 0x2c0   :  { %v1011_v43 = vrot.slane %v1010_v29, 1 }
 0x2c1   :  { %v1019_v59 = vmax.f32 %v1017_v36, %v1018_v23 }
 0x2c2   :  { %v1012_v44 = vmax.f32 %v1010_v29, %v1011_v43 }
 0x2c3   :  { %v1021_v30 = vpack.c.bf16 %v1019_v59, %v1019_v59 }
 0x2c4   :  { %v1020_v38 = vpack.c.bf16 %v1012_v44, %v1012_v44 }
 0x2c5   :  { %v1048_v39 = vunpack.c.l.b16 %v1021_v30 }
 0x2c6   :  { %v1047_v40 = vunpack.c.l.b16 %v1020_v38 }
 0x2c8   :  { %v1050_v5 = vsel %vm1049_vm0, %v1048_v39, %v1047_v40 }
 0x2c9   :  { %v1051_v45 = vpack.c.b16 %v1050_v5, %v1050_v5 }
 0x2cb   :  { %1490 = vmatmul.mubr.bf16.vlgmr.msra.gmra.mrb[12].mxu0 %v1051_v45 }
 0x39e   :  { %v1135_v15 = vpop.f32.mrb[12].mxu0 }
 0x39f   :  { %v1136_v35 = vadd.f32 %v1338_v6, %v1135_v15  ;;  %v1491_v51 = vpop.f32.mrb[13].mxu0 }
 0x3a0   :  { %v1138_v53 = vpop.f32.mrb[14].mxu0 }
 0x3a1   :  { %v1141_v3 = vmax.f32 %v1136_v35, 0.0  ;;  %v1492_v31 = vpop.f32.mrb[15].mxu0 }
 0x3a3   :  { %v1142_v4 = vpack.c.bf16 %v1141_v3, %v1141_v3 }
 0x3a5   :  { %1510 = vmatmul.mubr.bf16.vlgmr.msra.gmra.mrb[4].mxu1 %v1142_v4 }
 0x478   :  { %v1248_v41 = vpop.f32.mrb[4].mxu1 }
 0x479   :  { %v1249_v55 = vadd.f32 %v1347_v18, %v1248_v41  ;;  %v1511_v1 = vpop.f32.mrb[5].mxu1 }
 0x47a   :  { %v1251_v50 = vpop.f32.mrb[6].mxu1 }
 0x47b   :  { %v1254_v52 = vsub.f32 0.0, %v1249_v55  ;;  %v1512_v56 = vpop.f32.mrb[7].mxu1 }
 0x47d   :  { %v1255_v57 = vmul.f32 1.442695, %v1254_v52 }
 0x47f   :  { %1577 = vpow2.f32 %v1255_v57 }
 0x489   :  { %v1578_v58 = vpop.eup %1577 }
 0x48a   :  { %v1257_v47 = vadd.f32 1.0, %v1578_v58 }
 0x48c   :  { %1579 = vrcp.f32 %v1257_v47 }
 0x496   :  { %v1580_v60 = vpop.eup %1579 }
 0x497   :  { %1259 = vst [vmem:[#allocation7] sm:$0x3] %v1580_v60 }
 0x498   :  { %1636 = shalt.err (!%p1633_p6)
}
 0x499   :  { %s1637_s0 = scalar_lea.hbm %s2172_s9, 32 }
 0x49a   :  { %p1638_p7 = scmp.ne.s32.totalorder %s2172_s9, %s1637_s0  ;;  %p1641_p8 = scmp.lt.u32.totalorder %s1637_s0, %s2172_s9 }
 0x49c   :  { %p1643_p9 = pnand %p1641_p8, %p1638_p7 }
 0x49e   :  { %1646 = shalt.err (!%p1643_p9)
}
 0x49f   :  { %1269 = dma.vmem_to_hbm [thread:$0]  %s1267_s29, 32, %s2172_s9, [#allocation4]  }
 0x4a0   :  { %1651 = dma.done.wait [#allocation4], 32  }
 0x4a1   :  { %1652 = vsyncadd [#allocation4], 4294967264 }
 0x4a2   :  { %1273 = vsyncpa [#allocation3], 1 }
 0x4a3   :  { %1274 = vsyncpa [#allocation6], 1 }
 0x4a4   :  { %1275 = vsyncpa [#allocation4], 1 }

</bundles_post_ra>
